<compile_context>
chip_gen: v7x
topology: tpu7x:2x2x1
jax: 0.10.0
libtpu: 0.0.40
codegen_flags: <defaults>
</compile_context>

<pallas_src>
import functools

import jax
import jax.numpy as jnp
from jax.experimental import pallas as pl
from jax.experimental.pallas import tpu as pltpu

BATCH_SIZE = 10
BATCH_PAD = 16          # batch padded to a sublane multiple (8) for full vregs
INPUT_SIZE = 1
H1, H2, H3 = 64, 32, 16
OUTPUT_SIZE = 2

PAD = 128               # lane width; every packed section uses all 128 lanes

# Packed-slab row offsets (all 8-aligned sections, full 128-lane rows).
ROW_W1 = 0              # row 0           : w1[0, :H1]  (layer-1 weight row)
ROW_B1 = 1              # row 1           : b1[:H1]
ROW_B2 = 2              # row 2           : b2[:H2]
ROW_B3 = 3              # row 3           : b3[:H3]
ROW_B4 = 4              # row 4           : b4[:OUTPUT_SIZE]
ROW_W2 = 8              # rows   8..135   : W2 padded to (128,128), [:H1,:H2] valid
ROW_W3 = ROW_W2 + PAD   # rows 136..263   : W3 padded to (128,128), [:H2,:H3] valid
ROW_W4 = ROW_W3 + PAD   # rows 264..391   : W4 padded to (128,128), [:H3,:OUT] valid
SLAB_ROWS = ROW_W4 + PAD  # 392 rows (~196 KB f32) -- trivially fits VMEM


def _mlp_kernel(x_ref, p_ref, o_ref):
    """Whole forward pass in one kernel invocation (no grid needed)."""
    x = x_ref[...]                              # (BATCH_PAD, 1) f32

    w1 = p_ref[ROW_W1:ROW_W1 + 1, :]            # (1, 128); cols >= H1 are zero
    b1 = p_ref[ROW_B1:ROW_B1 + 1, :]
    b2 = p_ref[ROW_B2:ROW_B2 + 1, :]
    b3 = p_ref[ROW_B3:ROW_B3 + 1, :]
    b4 = p_ref[ROW_B4:ROW_B4 + 1, :]

    # Layer 1 (K = 1): degenerate outer product -> VPU broadcast multiply,
    # no MXU round trip on the critical path.
    h = jnp.maximum(x * w1 + b1, 0.0)           # (BATCH_PAD, 128); pad cols 0

    # Layers 2-4: lane-dense padded MXU matmuls. Zero-padded weight rows/cols
    # meet zero-padded activation columns, so the padding is exact.
    w2 = p_ref[ROW_W2:ROW_W2 + PAD, :]          # (128, 128)
    h = jnp.maximum(
        jnp.dot(h, w2, preferred_element_type=jnp.float32) + b2, 0.0)
    w3 = p_ref[ROW_W3:ROW_W3 + PAD, :]
    h = jnp.maximum(
        jnp.dot(h, w3, preferred_element_type=jnp.float32) + b3, 0.0)
    w4 = p_ref[ROW_W4:ROW_W4 + PAD, :]
    out = jnp.dot(h, w4, preferred_element_type=jnp.float32) + b4

    # Fully unmasked lane-dense store (BATCH_PAD, 128); real outputs live in
    # rows [0, BATCH_SIZE) x cols [0, OUTPUT_SIZE).
    o_ref[...] = out.astype(o_ref.dtype)


def pack_params(params):
    """Pack all weights/biases into one zero-padded VMEM-friendly slab.

    Built once and reused across calls -- parameters stay resident as a single
    array instead of 9 separately-DMA'd tensors.
    """
    (w1, b1), (w2, b2), (w3, b3), (w4, b4) = params
    slab = jnp.zeros((SLAB_ROWS, PAD), jnp.float32)
    slab = slab.at[ROW_W1, :H1].set(w1[0].astype(jnp.float32))
    slab = slab.at[ROW_B1, :H1].set(b1[0].astype(jnp.float32))
    slab = slab.at[ROW_B2, :H2].set(b2[0].astype(jnp.float32))
    slab = slab.at[ROW_B3, :H3].set(b3[0].astype(jnp.float32))
    slab = slab.at[ROW_B4, :OUTPUT_SIZE].set(b4[0].astype(jnp.float32))
    slab = slab.at[ROW_W2:ROW_W2 + H1, :H2].set(w2.astype(jnp.float32))
    slab = slab.at[ROW_W3:ROW_W3 + H2, :H3].set(w3.astype(jnp.float32))
    slab = slab.at[ROW_W4:ROW_W4 + H3, :OUTPUT_SIZE].set(w4.astype(jnp.float32))
    return slab


@jax.jit
def net_forward(x, packed_params):
    """Forward pass matching Net.forward: reshape(BATCH_SIZE, -1) -> 4 linears."""
    x2d = x.reshape(BATCH_SIZE, -1).astype(jnp.float32)     # glue reshape in JAX
    # Pad batch 10 -> 16 so every in-kernel vreg row group is fully populated
    # and the output store is unmasked.  Padded rows are discarded below.
    x_pad = jnp.pad(x2d, ((0, BATCH_PAD - BATCH_SIZE), (0, 0)))
    vmem = functools.partial(pl.BlockSpec, memory_space=pltpu.VMEM)
    y_padded = pl.pallas_call(
        _mlp_kernel,
        out_shape=jax.ShapeDtypeStruct((BATCH_PAD, PAD), jnp.float32),
        in_specs=[vmem(), vmem()],
        out_specs=vmem(),
    )(x_pad, packed_params)
    return y_padded[:BATCH_SIZE, :OUTPUT_SIZE]


def init_params(key):
    """Deterministic init mimicking PyTorch nn.Linear default U(-1/sqrt(fan_in), +)."""
    dims = [(INPUT_SIZE, H1), (H1, H2), (H2, H3), (H3, OUTPUT_SIZE)]
    params = []
    for (fan_in, fan_out) in dims:
        key, kw, kb = jax.random.split(key, 3)
        bound = 1.0 / (fan_in ** 0.5)
        w = jax.random.uniform(kw, (fan_in, fan_out), jnp.float32, -bound, bound)
        b = jax.random.uniform(kb, (1, fan_out), jnp.float32, -bound, bound)
        params.append((w, b))
    return params


def reference_forward(x, params):
    """Pure-JAX reference for correctness checking."""
    h = x.reshape(BATCH_SIZE, -1).astype(jnp.float32)
    (w1, b1), (w2, b2), (w3, b3), (w4, b4) = params
    h = jnp.maximum(h @ w1 + b1, 0.0)
    h = jnp.maximum(h @ w2 + b2, 0.0)
    h = jnp.maximum(h @ w3 + b3, 0.0)
    return h @ w4 + b4


if __name__ == "__main__":
    key = jax.random.PRNGKey(0)
    key, kx = jax.random.split(key)

    # Scalar time input per example: shape (BATCH_SIZE, 1), as implied by input_size=1.
    x = jax.random.normal(kx, (BATCH_SIZE, INPUT_SIZE), jnp.float32)
    params = init_params(key)

    packed = pack_params(params)          # one-time packing; reused across calls
    out = net_forward(x, packed)
    jax.block_until_ready(out)

    ref = reference_forward(x, params)
    assert out.shape == (BATCH_SIZE, OUTPUT_SIZE), out.shape
    assert jnp.allclose(out, ref, atol=1e-5, rtol=1e-5), "mismatch vs reference"

    print("KERNEL_OK")
</pallas_src>

<mosaic_0001>
module attributes {stable_mosaic.version = 11 : i64} {
  func.func @_mlp_kernel(%arg0: memref<16x1xf32, #tpu.memory_space<vmem>>, %arg1: memref<392x128xf32, #tpu.memory_space<vmem>>, %arg2: memref<16x128xf32, #tpu.memory_space<vmem>>) attributes {dimension_semantics = [], scalar_prefetch = 0 : i64, scratch_operands = 0 : i64, tpu.core_type = #tpu.core_type<tc>} {
    %c0 = arith.constant 0 : index
    %c0_0 = arith.constant 0 : index
    %0 = vector.load %arg0[%c0, %c0_0] : memref<16x1xf32, #tpu.memory_space<vmem>>, vector<16x1xf32>
    %c0_1 = arith.constant 0 : index
    %c0_2 = arith.constant 0 : index
    %1 = vector.load %arg1[%c0_1, %c0_2] : memref<392x128xf32, #tpu.memory_space<vmem>>, vector<1x128xf32>
    %c1 = arith.constant 1 : index
    %c0_3 = arith.constant 0 : index
    %2 = vector.load %arg1[%c1, %c0_3] : memref<392x128xf32, #tpu.memory_space<vmem>>, vector<1x128xf32>
    %c2 = arith.constant 2 : index
    %c0_4 = arith.constant 0 : index
    %3 = vector.load %arg1[%c2, %c0_4] : memref<392x128xf32, #tpu.memory_space<vmem>>, vector<1x128xf32>
    %c3 = arith.constant 3 : index
    %c0_5 = arith.constant 0 : index
    %4 = vector.load %arg1[%c3, %c0_5] : memref<392x128xf32, #tpu.memory_space<vmem>>, vector<1x128xf32>
    %c4 = arith.constant 4 : index
    %c0_6 = arith.constant 0 : index
    %5 = vector.load %arg1[%c4, %c0_6] : memref<392x128xf32, #tpu.memory_space<vmem>>, vector<1x128xf32>
    %6 = vector.broadcast %0 : vector<16x1xf32> to vector<16x128xf32>
    %7 = vector.broadcast %1 : vector<1x128xf32> to vector<16x128xf32>
    %8 = arith.mulf %6, %7 : vector<16x128xf32>
    %9 = vector.broadcast %2 : vector<1x128xf32> to vector<16x128xf32>
    %10 = arith.addf %8, %9 : vector<16x128xf32>
    %cst = arith.constant 0.000000e+00 : f32
    %11 = vector.broadcast %cst : f32 to vector<16x128xf32>
    %12 = arith.maximumf %10, %11 : vector<16x128xf32>
    %c8 = arith.constant 8 : index
    %c0_7 = arith.constant 0 : index
    %13 = vector.load %arg1[%c8, %c0_7] : memref<392x128xf32, #tpu.memory_space<vmem>>, vector<128x128xf32>
    %cst_8 = arith.constant dense<0.000000e+00> : vector<16x128xf32>
    %14 = tpu.matmul %12, %13, %cst_8 {dimension_numbers = #tpu.dot_dimension_numbers<[1], [0], [0], [1], [0, 0, 1, 1], [], []>} : vector<16x128xf32>, vector<128x128xf32>, vector<16x128xf32> -> vector<16x128xf32>
    %15 = vector.broadcast %3 : vector<1x128xf32> to vector<16x128xf32>
    %16 = arith.addf %14, %15 : vector<16x128xf32>
    %cst_9 = arith.constant 0.000000e+00 : f32
    %17 = vector.broadcast %cst_9 : f32 to vector<16x128xf32>
    %18 = arith.maximumf %16, %17 : vector<16x128xf32>
    %c136 = arith.constant 136 : index
    %c0_10 = arith.constant 0 : index
    %19 = vector.load %arg1[%c136, %c0_10] : memref<392x128xf32, #tpu.memory_space<vmem>>, vector<128x128xf32>
    %cst_11 = arith.constant dense<0.000000e+00> : vector<16x128xf32>
    %20 = tpu.matmul %18, %19, %cst_11 {dimension_numbers = #tpu.dot_dimension_numbers<[1], [0], [0], [1], [0, 0, 1, 1], [], []>} : vector<16x128xf32>, vector<128x128xf32>, vector<16x128xf32> -> vector<16x128xf32>
    %21 = vector.broadcast %4 : vector<1x128xf32> to vector<16x128xf32>
    %22 = arith.addf %20, %21 : vector<16x128xf32>
    %cst_12 = arith.constant 0.000000e+00 : f32
    %23 = vector.broadcast %cst_12 : f32 to vector<16x128xf32>
    %24 = arith.maximumf %22, %23 : vector<16x128xf32>
    %c264 = arith.constant 264 : index
    %c0_13 = arith.constant 0 : index
    %25 = vector.load %arg1[%c264, %c0_13] : memref<392x128xf32, #tpu.memory_space<vmem>>, vector<128x128xf32>
    %cst_14 = arith.constant dense<0.000000e+00> : vector<16x128xf32>
    %26 = tpu.matmul %24, %25, %cst_14 {dimension_numbers = #tpu.dot_dimension_numbers<[1], [0], [0], [1], [0, 0, 1, 1], [], []>} : vector<16x128xf32>, vector<128x128xf32>, vector<16x128xf32> -> vector<16x128xf32>
    %27 = vector.broadcast %5 : vector<1x128xf32> to vector<16x128xf32>
    %28 = arith.addf %26, %27 : vector<16x128xf32>
    %c0_15 = arith.constant 0 : index
    %c0_16 = arith.constant 0 : index
    %29 = vector.load %arg2[%c0_15, %c0_16] : memref<16x128xf32, #tpu.memory_space<vmem>>, vector<16x128xf32>
    tpu.vector_store %arg2[%c0_15, %c0_16], %28 {strides = array<i32>} : memref<16x128xf32, #tpu.memory_space<vmem>>, vector<16x128xf32>,
    return
  }
}

</mosaic_0001>

<bundles_post_ra>
// kernel: net_forward.1
= control target key start
LH: loop header
LB: loop body
LE: loop exit
PB: predicated region body
PF: predicated region fallthrough
CT: control target
= control target key end

     0   :  { %7 = vsyncpa [#allocation3], 0  ;;  %s641_s9 = smov [#allocation2]   ;;  %s684_s0 = inlined_call_operand.vmem [shape: f32[16,1], index: 0, kind: input, shape index: {}]   ;;  %s685_s1 = inlined_call_operand.hbm [shape: f32[392,128], index: 1, kind: input, shape index: {}]   ;;  %s686_s2 = inlined_call_operand.vmem [shape: f32[16,128], index: 2, kind: output, shape index: {}]  }
   0x1   :  { %s15_s10 = sshll.u32 %s641_s9, 4  ;;  %s617_s13 = scalar_lea.hbm %s685_s1, 6272  ;;  %s16_s10 = int_to_ptr.vmem [resolvable:$true] %s15_s10 }
   0x2   :  { %p618_p0 = scmp.ne.s32.totalorder %s685_s1, %s617_s13  ;;  %p621_p1 = scmp.lt.u32.totalorder %s617_s13, %s685_s1 }
   0x4   :  { %p623_p2 = pnand %p621_p1, %p618_p0 }
   0x6   :  { %626 = shalt.err (!%p623_p2)
}
   0x7   :  { %s627_s18 = scalar_lea.vmem %s16_s10, 6272  ;;  %p632_p4 = scmp.lt.s32.totalorder %s16_s10, %s16_s10 }
   0x8   :  { %p628_p3 = scmp.ne.s32.totalorder %s16_s10, %s627_s18  ;;  %p633_p5 = scmp.lt.s32.totalorder %s627_s18, %s627_s18 }
   0xa   :  { %p634_p6 = por %p633_p5, %p632_p4 }
   0xc   :  { %p635_p7 = pnand %p634_p6, %p628_p3 }
   0xe   :  { %638 = shalt.err (!%p635_p7)
}
   0xf   :  { %s642_s19 = smov 128   ;;  %s643_s20 = smov 8  }
  0x10   :  { %21 = dma.hbm_to_vmem [thread:$0]  %s685_s1, 6272, %s16_s10, [#allocation3], %s642_s19, %s642_s19, %s643_s20  }
  0x11   :  { %639 = dma.done.wait [#allocation3], 6272  }
  0x12   :  { %640 = vsyncadd [#allocation3], 4294961024  ;;  %v644_v0 = vmov 0   ;;  %v25_v1 = vld [vmem:[%s684_s0] sm:$0xff]  ;;  %v56_v2 = vld [vmem:[#allocation2 + $0x8] sm:$0xff] }
  0x13   :  { %616 = vset.pattern.permute.xlu0 %v644_v0  ;;  %v57_v3 = vld [vmem:[#allocation2 + $0x10] sm:$0xff]  ;;  %v58_v4 = vld [vmem:[#allocation2 + $0x18] sm:$0xff]  ;;  %v59_v5 = vld [vmem:[#allocation2 + $0x20] sm:$0xff] }
  0x14   :  { %34 = vperm.xlu0 %616, %v25_v1   ;;  %v26_v6 = vld [vmem:[%s684_s0 + $0x8] sm:$0xff]  ;;  %v516_v7 = vpack.c.bf16 %v57_v3, %v56_v2  ;;  %v520_v8 = vpack.c.bf16 %v59_v5, %v58_v4  ;;  %v61_v10 = vld [vmem:[#allocation2 + $0x30] sm:$0xff]  ;;  %v62_v12 = vld [vmem:[#allocation2 + $0x38] sm:$0xff] }
  0x15   :  { %v60_v9 = vld [vmem:[#allocation2 + $0x28] sm:$0xff]  ;;  %v63_v13 = vld [vmem:[#allocation2 + $0x40] sm:$0xff]  ;;  %v65_v16 = vld [vmem:[#allocation2 + $0x50] sm:$0xff] }
  0x16   :  { %517 = vmatprep.subr.bf16.mxu0 %v516_v7  ;;  %v524_v11 = vpack.c.bf16 %v61_v10, %v60_v9  ;;  %v528_v14 = vpack.c.bf16 %v63_v13, %v62_v12  ;;  %v64_v15 = vld [vmem:[#allocation2 + $0x48] sm:$0xff]  ;;  %v154_v18 = vld [vmem:[#allocation2 + $0x90] sm:$0xff]  ;;  %v155_v19 = vld [vmem:[#allocation2 + $0x98] sm:$0xff] }
  0x17   :  { %519 = vmatpush3.bf16.msra.mxu0 %v516_v7  ;;  %v153_v17 = vld [vmem:[#allocation2 + $0x88] sm:$0xff]  ;;  %v156_v21 = vld [vmem:[#allocation2 + $0xa0] sm:$0xff]  ;;  %v158_v24 = vld [vmem:[#allocation2 + $0xb0] sm:$0xff]  ;;  %v532_v25 = vpack.c.bf16 %v65_v16, %v64_v15 }
  0x18   :  { %39 = vperm.xlu0 %616, %v26_v6   ;;  %521 = vmatprep.subr.bf16.mxu0 %v520_v8  ;;  %v548_v20 = vpack.c.bf16 %v154_v18, %v153_v17  ;;  %v552_v22 = vpack.c.bf16 %v156_v21, %v155_v19  ;;  %v157_v23 = vld [vmem:[#allocation2 + $0xa8] sm:$0xff]  ;;  %v66_v26 = vld [vmem:[#allocation2 + $0x58] sm:$0xff]  ;;  %v67_v27 = vld [vmem:[#allocation2 + $0x60] sm:$0xff] }
  0x19   :  { %v556_v28 = vpack.c.bf16 %v158_v24, %v157_v23  ;;  %v159_v29 = vld [vmem:[#allocation2 + $0xb8] sm:$0xff]  ;;  %v160_v30 = vld [vmem:[#allocation2 + $0xc0] sm:$0xff]  ;;  %v536_v31 = vpack.c.bf16 %v67_v27, %v66_v26  ;;  %v68_v32 = vld [vmem:[#allocation2 + $0x68] sm:$0xff] }
  0x1a   :  { %549 = vmatprep.subr.bf16.mxu1 %v548_v20  ;;  %v69_v33 = vld [vmem:[#allocation2 + $0x70] sm:$0xff]  ;;  %v560_v34 = vpack.c.bf16 %v160_v30, %v159_v29  ;;  %v161_v35 = vld [vmem:[#allocation2 + $0xc8] sm:$0xff]  ;;  %v70_v38 = vld [vmem:[#allocation2 + $0x78] sm:$0xff] }
  0x1b   :  { %523 = vmatpush3.bf16.msra.mxu0 %v520_v8  ;;  %551 = vmatpush3.bf16.msra.mxu1 %v548_v20  ;;  %v162_v36 = vld [vmem:[#allocation2 + $0xd0] sm:$0xff]  ;;  %v540_v37 = vpack.c.bf16 %v69_v33, %v68_v32  ;;  %v71_v39 = vld [vmem:[#allocation2 + $0x80] sm:$0xff]  ;;  %v163_v41 = vld [vmem:[#allocation2 + $0xd8] sm:$0xff] }
  0x1c   :  { %525 = vmatprep.subr.bf16.mxu0 %v524_v11  ;;  %553 = vmatprep.subr.bf16.mxu1 %v552_v22  ;;  %v564_v40 = vpack.c.bf16 %v162_v36, %v161_v35  ;;  %v164_v42 = vld [vmem:[#allocation2 + $0xe0] sm:$0xff]  ;;  %v544_v43 = vpack.c.bf16 %v71_v39, %v70_v38  ;;  %v165_v45 = vld [vmem:[#allocation2 + $0xe8] sm:$0xff]  ;;  %v166_v46 = vld [vmem:[#allocation2 + $0xf0] sm:$0xff] }
  0x1d   :  { %v568_v44 = vpack.c.bf16 %v164_v42, %v163_v41  ;;  %v572_v47 = vpack.c.bf16 %v166_v46, %v165_v45  ;;  %v352_v48 = vld [vmem:[#allocation2] ss:$0 sm:$0xff]  ;;  %v353_v50 = vld [vmem:[#allocation2 + $0x1] ss:$0 sm:$0xff]  ;;  %v167_v58 = vld [vmem:[#allocation2 + $0xf8] sm:$0xff] }
  0x1e   :  { %v168_v59 = vld [vmem:[#allocation2 + $0x100] sm:$0xff]  ;;  %v250_v61 = vld [vmem:[#allocation2 + $0x108] sm:$0xff]  ;;  %v251_v62 = vld [vmem:[#allocation2 + $0x110] sm:$0xff] }
  0x1f   :  { %527 = vmatpush3.bf16.msra.mxu0 %v524_v11  ;;  %555 = vmatpush3.bf16.msra.mxu1 %v552_v22  ;;  %v576_v60 = vpack.c.bf16 %v168_v59, %v167_v58  ;;  %v252_v63 = vld [vmem:[#allocation2 + $0x118] sm:$0xff]  ;;  %v580_v0 = vpack.c.bf16 %v251_v62, %v250_v61  ;;  %v253_v1 = vld [vmem:[#allocation2 + $0x120] sm:$0xff]  ;;  %v254_v3 = vld [vmem:[#allocation2 + $0x128] sm:$0xff] }
  0x20   :  { %529 = vmatprep.subr.bf16.mxu0 %v528_v14  ;;  %557 = vmatprep.subr.bf16.mxu1 %v556_v28  ;;  %v584_v2 = vpack.c.bf16 %v253_v1, %v252_v63  ;;  %v255_v4 = vld [vmem:[#allocation2 + $0x130] sm:$0xff]  ;;  %v256_v6 = vld [vmem:[#allocation2 + $0x138] sm:$0xff]  ;;  %v257_v7 = vld [vmem:[#allocation2 + $0x140] sm:$0xff] }
  0x21   :  { %v588_v5 = vpack.c.bf16 %v255_v4, %v254_v3  ;;  %v592_v8 = vpack.c.bf16 %v257_v7, %v256_v6  ;;  %v258_v9 = vld [vmem:[#allocation2 + $0x148] sm:$0xff]  ;;  %v259_v10 = vld [vmem:[#allocation2 + $0x150] sm:$0xff]  ;;  %v260_v12 = vld [vmem:[#allocation2 + $0x158] sm:$0xff] }
  0x22   :  { %v596_v11 = vpack.c.bf16 %v259_v10, %v258_v9  ;;  %v261_v13 = vld [vmem:[#allocation2 + $0x160] sm:$0xff]  ;;  %v262_v15 = vld [vmem:[#allocation2 + $0x168] sm:$0xff]  ;;  %v263_v16 = vld [vmem:[#allocation2 + $0x170] sm:$0xff] }
  0x23   :  { %531 = vmatpush3.bf16.msra.mxu0 %v528_v14  ;;  %559 = vmatpush3.bf16.msra.mxu1 %v556_v28  ;;  %v600_v14 = vpack.c.bf16 %v261_v13, %v260_v12  ;;  %v604_v17 = vpack.c.bf16 %v263_v16, %v262_v15  ;;  %v354_v18 = vld [vmem:[#allocation2 + $0x2] ss:$0 sm:$0xff]  ;;  %v355_v28 = vld [vmem:[#allocation2 + $0x3] ss:$0 sm:$0xff]  ;;  %v356_v35 = vld [vmem:[#allocation2 + $0x4] ss:$0 sm:$0xff] }
  0x24   :  { %533 = vmatprep.subr.bf16.mxu0 %v532_v25  ;;  %561 = vmatprep.subr.bf16.mxu1 %v560_v34  ;;  %v265_v26 = vld [vmem:[#allocation2 + $0x180] sm:$0xff] }
  0x27   :  { %535 = vmatpush3.bf16.msra.mxu0 %v532_v25  ;;  %563 = vmatpush3.bf16.msra.mxu1 %v560_v34  ;;  %v264_v25 = vld [vmem:[#allocation2 + $0x178] sm:$0xff] }
  0x28   :  { %537 = vmatprep.subr.bf16.mxu0 %v536_v31  ;;  %565 = vmatprep.subr.bf16.mxu1 %v564_v40  ;;  %v608_v27 = vpack.c.bf16 %v265_v26, %v264_v25 }
  0x2b   :  { %539 = vmatpush3.bf16.msra.mxu0 %v536_v31  ;;  %567 = vmatpush3.bf16.msra.mxu1 %v564_v40 }
  0x2c   :  { %541 = vmatprep.subr.bf16.mxu0 %v540_v37  ;;  %569 = vmatprep.subr.bf16.mxu1 %v568_v44 }
  0x2f   :  { %543 = vmatpush3.bf16.msra.mxu0 %v540_v37  ;;  %571 = vmatpush3.bf16.msra.mxu1 %v568_v44 }
  0x30   :  { %545 = vmatprep.subr.bf16.mxu0 %v544_v43  ;;  %573 = vmatprep.subr.bf16.mxu1 %v572_v47 }
  0x33   :  { %547 = vmatpush3.bf16.msra.mxu0 %v544_v43  ;;  %575 = vmatpush3.bf16.msra.mxu1 %v572_v47 }
  0x34   :  { %577 = vmatprep.subr.bf16.mxu1 %v576_v60  ;;  %581 = vmatprep.subr.bf16.mxu0 %v580_v0 }
  0x37   :  { %579 = vmatpush3.bf16.msra.mxu1 %v576_v60 }
  0x93   :  { %v35_v49 = vpop.permute.xlu0 %34 }
  0x94   :  { %v46_v51 = vmul.f32 %v352_v48, %v35_v49 }
  0x96   :  { %v52_v52 = vadd.f32 %v353_v50, %v46_v51 }
  0x97   :  { %v40_v53 = vpop.permute.xlu0 %39 }
  0x98   :  { %v47_v54 = vmul.f32 %v352_v48, %v40_v53  ;;  %v54_v55 = vmax.f32 %v52_v52, 0.0 }
  0x9a   :  { %v53_v56 = vadd.f32 %v353_v50, %v47_v54  ;;  %443 = vmatprep.mubr.f32.mxu0 %v54_v55 }
  0x9c   :  { %v55_v57 = vmax.f32 %v53_v56, 0.0 }
  0x9e   :  { %444 = vmatmul.mubr.f32.vlgmr.msra.gmra.mrb[0].mxu0 %v55_v57 }
  0x9f   :  { %583 = vmatpush3.bf16.msra.mxu0 %v580_v0 }
  0xa0   :  { %585 = vmatprep.subr.bf16.mxu0 %v584_v2 }
  0xa3   :  { %587 = vmatpush3.bf16.msra.mxu0 %v584_v2 }
  0xa4   :  { %589 = vmatprep.subr.bf16.mxu0 %v588_v5 }
  0xa7   :  { %591 = vmatpush3.bf16.msra.mxu0 %v588_v5 }
  0xa8   :  { %593 = vmatprep.subr.bf16.mxu0 %v592_v8 }
  0xab   :  { %595 = vmatpush3.bf16.msra.mxu0 %v592_v8 }
  0xac   :  { %597 = vmatprep.subr.bf16.mxu0 %v596_v11 }
  0xaf   :  { %599 = vmatpush3.bf16.msra.mxu0 %v596_v11 }
  0xb0   :  { %601 = vmatprep.subr.bf16.mxu0 %v600_v14 }
  0xb3   :  { %603 = vmatpush3.bf16.msra.mxu0 %v600_v14 }
  0xb4   :  { %605 = vmatprep.subr.bf16.mxu0 %v604_v17 }
  0xb7   :  { %607 = vmatpush3.bf16.msra.mxu0 %v604_v17 }
  0xb8   :  { %609 = vmatprep.subr.bf16.mxu0 %v608_v27 }
  0xbb   :  { %611 = vmatpush3.bf16.msra.mxu0 %v608_v27 }
 0x171   :  { %v445_v19 = vpop.f32.mrb[0].mxu0 }
 0x172   :  { %v148_v20 = vadd.f32 %v445_v19, %v354_v18  ;;  %v142_v21 = vpop.f32.mrb[1].mxu0 }
 0x173   :  { %v143_v22 = vadd.f32 %v354_v18, %v142_v21 }
 0x174   :  { %v152_v24 = vmax.f32 %v148_v20, 0.0 }
 0x175   :  { %v151_v23 = vmax.f32 %v143_v22, 0.0 }
 0x177   :  { %478 = vmatprep.mubr.f32.mxu1 %v151_v23 }
 0x178   :  { %479 = vmatmul.mubr.f32.vlgmr.msra.gmra.mrb[0].mxu1 %v152_v24 }
 0x24b   :  { %v480_v29 = vpop.f32.mrb[0].mxu1 }
 0x24c   :  { %v245_v30 = vadd.f32 %v480_v29, %v355_v28  ;;  %v239_v31 = vpop.f32.mrb[1].mxu1 }
 0x24d   :  { %v240_v32 = vadd.f32 %v355_v28, %v239_v31 }
 0x24e   :  { %v249_v34 = vmax.f32 %v245_v30, 0.0 }
 0x24f   :  { %v248_v33 = vmax.f32 %v240_v32, 0.0 }
 0x251   :  { %513 = vmatprep.mubr.f32.mxu0 %v248_v33 }
 0x252   :  { %514 = vmatmul.mubr.f32.vlgmr.msra.gmra.mrb[2].mxu0 %v249_v34 }
 0x325   :  { %v515_v36 = vpop.f32.mrb[2].mxu0 }
 0x326   :  { %v342_v37 = vadd.f32 %v515_v36, %v356_v35  ;;  %v336_v38 = vpop.f32.mrb[3].mxu0 }
 0x327   :  { %v337_v39 = vadd.f32 %v356_v35, %v336_v38 }
 0x328   :  { %346 = vst [vmem:[%s686_s2 + $0x8] sm:$0xff] %v342_v37 }
 0x329   :  { %345 = vst [vmem:[%s686_s2] sm:$0xff] %v337_v39 }
 0x32a   :  { %351 = vsyncpa [#allocation3], 1 }

</bundles_post_ra>
